<compile_context>
chip_gen: v7x
topology: tpu7x:2x2x1
jax: 0.10.0
libtpu: 0.0.40
codegen_flags: <defaults>
</compile_context>

<pallas_src>
import functools

import jax
import jax.numpy as jnp
from jax.experimental import pallas as pl
from jax.experimental.pallas import tpu as pltpu


# ---------------------------------------------------------------------------
# Kernel
# ---------------------------------------------------------------------------
def _csa_kernel(s_ref, t_ref, out_ref, *, tau, hw):
    """One grid step == one folded batch block.

    s_ref, t_ref : (nb, C, HW) VMEM tiles (student / teacher features, native dtype)
    out_ref      : (nb, 1, 1) per-batch masked squared-difference sums (f32)
    """
    f32 = jnp.float32
    inv_tau = 1.0 / float(tau)
    nb, C, HW = s_ref.shape

    s = s_ref[...]                      # (nb, C, HW) native dtype (e.g. bf16)
    t = t_ref[...]

    def masks(a):
        # a = |x| in native dtype; reductions accumulate in f32.
        # spatial mask: softmax over HW of mean_C(|x|), scaled by H*W
        sp = jnp.sum(a, axis=1, keepdims=True, dtype=f32) * (inv_tau / C)      # (nb,1,HW)
        sp = sp - jnp.max(sp, axis=2, keepdims=True)
        e = jnp.exp(sp)
        sp_m = (e / jnp.sum(e, axis=2, keepdims=True)) * float(hw)             # (nb,1,HW)
        # channel mask: softmax over C of mean_HW(|x|), scaled by 256
        # (the x256 is hard-coded in the PyTorch module, independent of C)
        ch = jnp.sum(a, axis=2, keepdims=True, dtype=f32) * (inv_tau / hw)     # (nb,C,1)
        ch = ch - jnp.max(ch, axis=1, keepdims=True)
        e2 = jnp.exp(ch)
        ch_m = (e2 / jnp.sum(e2, axis=1, keepdims=True)) * 256.0               # (nb,C,1)
        return sp_m, ch_m

    # |x| computed once per input and shared by both masks; stays in native dtype.
    sp_t, ch_t = masks(jnp.abs(t))
    sp_s, ch_s = masks(jnp.abs(s))

    # s_ratio = c_ratio = 1.0 in the reference forward
    sum_mask = (sp_t + sp_s) * 0.5          # (nb, 1, HW) f32
    c_sum_mask = (ch_t + ch_s) * 0.5        # (nb, C, 1)  f32

    # Squared-difference path in f32 (this term dominates the loss).
    diff = (t.astype(f32) - s.astype(f32)) ** 2                                 # (nb,C,HW)

    # Factored reduction: lane-reduce with the spatial mask first, then a tiny
    # (C,1) weighted channel sum — exactly equal to the full masked (C,HW) sum.
    # TODO(synk): on v7x, if a bundle dump shows VALU/XLU saturated, this masked
    # lane reduction can be offloaded to the idle MXU as a (C,HW)x(HW,1) matmul.
    r = jnp.sum(diff * sum_mask, axis=2, keepdims=True)                         # (nb,C,1)
    out_ref[...] = jnp.sum(r * c_sum_mask, axis=1, keepdims=True)               # (nb,1,1)


# ---------------------------------------------------------------------------
# Wrapper / tiling heuristics
# ---------------------------------------------------------------------------
_MAX_BATCH_BLOCK = 64                     # cap on batch folding per grid step
_TARGET_INPUT_BYTES_PER_STEP = 4 << 20    # ~4 MiB native-dtype input per step


def _vmem_capacity_bytes():
    try:
        info = pltpu.get_tpu_info()
        cap = getattr(info, "vmem_capacity_bytes", None)
        if cap:
            return int(cap)
    except Exception:
        pass
    return 64 << 20  # conservative default (v7x per-TC VMEM)


def _working_set_bytes_per_batch(c, hw, itemsize):
    # 2 inputs x 2 pipeline buffers in native dtype + |s|,|t| native temporaries
    # + ~3 f32-sized live temporaries (diff, masked diff, misc).
    return c * hw * (6 * itemsize + 12)


def _pick_batch_block(n, c, hw, itemsize, vmem_budget):
    per_batch_ws = max(1, _working_set_bytes_per_batch(c, hw, itemsize))
    per_batch_in = max(1, c * hw * itemsize)
    nb_mem = max(1, vmem_budget // per_batch_ws)                 # fits VMEM budget
    nb_dma = max(1, _TARGET_INPUT_BYTES_PER_STEP // per_batch_in)  # amortize DMA/step
    nb = int(min(nb_mem, nb_dma, _MAX_BATCH_BLOCK, max(n, 1)))
    if n >= 2:
        # Keep >= 2 grid steps so "parallel" can shard across v7x's 2 TensorCores.
        nb = min(nb, (n + 1) // 2)
    return max(1, nb)


def channel_spatial_attention_loss(preds_S, preds_T, grads_S, grads_T,
                                   tau=1.0, loss_weight=0.004,
                                   policy="feature-based"):
    """Pallas implementation of ChannelSpatialAttention.forward (feature-based)."""
    assert policy == "feature-based"
    # TODO(synk): other policies ('gradient-based', 'mixed', 'added', ...) reuse this
    # same kernel with different (feature, gradient) tensor pairs; only
    # 'feature-based' is wired up here.  'grad-matching*' has no mask kernel at all.
    del grads_S, grads_T  # unused by the feature-based policy

    N, C, H, W = preds_S.shape
    assert preds_T.shape == preds_S.shape
    HW = H * W

    # Keep native dtype on the wire (bf16 halves HBM bytes); the kernel upcasts
    # only where precision matters.  If dtypes differ, promote both to a common one.
    common = jnp.result_type(preds_S.dtype, preds_T.dtype)
    s_flat = preds_S.astype(common).reshape(N, C, HW)
    t_flat = preds_T.astype(common).reshape(N, C, HW)
    itemsize = jnp.dtype(common).itemsize

    phys_vmem = _vmem_capacity_bytes()
    vmem_budget = min(max(phys_vmem - (16 << 20), 24 << 20), 96 << 20)

    nb = _pick_batch_block(N, C, HW, itemsize, vmem_budget)

    # Non-divisor batch sizes: zero-pad N.  Padded rows have diff == 0, so their
    # partial sums are exactly 0 and summing all partials stays correct.
    n_pad = -(-N // nb) * nb
    if n_pad != N:
        pad = n_pad - N
        s_flat = jnp.pad(s_flat, ((0, pad), (0, 0), (0, 0)))
        t_flat = jnp.pad(t_flat, ((0, pad), (0, 0), (0, 0)))
    grid = (n_pad // nb,)

    est_bytes = nb * _working_set_bytes_per_batch(C, HW, itemsize)
    vmem_limit = int(min(max(est_bytes + (8 << 20), 32 << 20),
                         max(phys_vmem - (8 << 20), 32 << 20)))
    # TODO(synk): very large feature maps (single batch element + temporaries beyond
    # the VMEM budget, e.g. C=256, HW~9K on v7x) need a two-pass HW-chunked grid
    # (pass 1: |x| statistics per chunk, pass 2: apply masks to (t-s)^2).

    kernel = functools.partial(_csa_kernel, tau=float(tau), hw=HW)

    partials = pl.pallas_call(
        kernel,
        out_shape=jax.ShapeDtypeStruct((n_pad, 1, 1), jnp.float32),
        grid=grid,
        in_specs=[
            pl.BlockSpec((nb, C, HW), lambda b: (b, 0, 0)),
            pl.BlockSpec((nb, C, HW), lambda b: (b, 0, 0)),
        ],
        out_specs=pl.BlockSpec((nb, 1, 1), lambda b: (b, 0, 0)),
        compiler_params=pltpu.CompilerParams(
            # Each grid step owns its own output block -> safe to shard across
            # TensorCores (2x on v7x megacore; no-op on v5e/v6e single-TC chips).
            dimension_semantics=("parallel",),
            vmem_limit_bytes=vmem_limit,
        ),
    )(s_flat, t_flat)

    total = jnp.sum(partials)
    kd_feat_loss = jnp.sqrt(total) * 0.01
    loss = loss_weight * kd_feat_loss / N
    return loss


# ---------------------------------------------------------------------------
# Pure-JAX reference (mirrors the PyTorch module) for a sanity check
# ---------------------------------------------------------------------------
def _reference_loss(preds_S, preds_T, tau=1.0, loss_weight=0.004):
    N, C, H, W = preds_S.shape

    def spatial_mask(f):
        m = jnp.mean(jnp.abs(f), axis=1, keepdims=True)          # (N,1,H,W)
        flat = m.reshape(N, -1)
        p = jax.nn.softmax(flat / tau, axis=1) * (H * W)
        return p.reshape(N, 1, H, W)

    def channel_mask(f):
        m = jnp.mean(jnp.abs(f), axis=(2, 3), keepdims=True)     # (N,C,1,1)
        flat = m.reshape(N, -1)
        p = jax.nn.softmax(flat / tau, axis=1) * 256.0
        return p.reshape(N, C, 1, 1)

    sm = (spatial_mask(preds_T) + spatial_mask(preds_S)) / 2.0
    cm = (channel_mask(preds_T) + channel_mask(preds_S)) / 2.0
    diff = (preds_T - preds_S) ** 2 * sm * cm
    kd_feat_loss = jnp.sqrt(jnp.sum(diff)) * 0.01
    return loss_weight * kd_feat_loss / N


if __name__ == "__main__":
    key = jax.random.PRNGKey(0)
    k1, k2, k3, k4 = jax.random.split(key, 4)
    N, C, H, W = 2, 4, 16, 16
    preds_S = jax.random.normal(k1, (N, C, H, W), dtype=jnp.float32)
    preds_T = jax.random.normal(k2, (N, C, H, W), dtype=jnp.float32)
    grads_S = jax.random.normal(k3, (N, C, H, W), dtype=jnp.float32)
    grads_T = jax.random.normal(k4, (N, C, H, W), dtype=jnp.float32)

    loss = jax.block_until_ready(
        channel_spatial_attention_loss(preds_S, preds_T, grads_S, grads_T))
    ref = jax.block_until_ready(_reference_loss(preds_S, preds_T))
    assert jnp.allclose(loss, ref, rtol=1e-3, atol=1e-6), (loss, ref)

    # bf16 feature maps (the usual KD setup) flow straight through; compare against
    # a reference computed on the same bf16-rounded values.
    s_bf16 = preds_S.astype(jnp.bfloat16)
    t_bf16 = preds_T.astype(jnp.bfloat16)
    loss_bf16 = jax.block_until_ready(
        channel_spatial_attention_loss(s_bf16, t_bf16, grads_S, grads_T))
    ref_bf16 = jax.block_until_ready(
        _reference_loss(s_bf16.astype(jnp.float32), t_bf16.astype(jnp.float32)))
    assert jnp.allclose(loss_bf16, ref_bf16, rtol=5e-3, atol=1e-6), (loss_bf16, ref_bf16)

    # odd (non-divisor-friendly) batch size exercises the zero-padding path
    N3 = 3
    s3 = jax.random.normal(k3, (N3, C, H, W), dtype=jnp.float32)
    t3 = jax.random.normal(k4, (N3, C, H, W), dtype=jnp.float32)
    loss3 = jax.block_until_ready(
        channel_spatial_attention_loss(s3, t3, s3, t3))
    ref3 = jax.block_until_ready(_reference_loss(s3, t3))
    assert jnp.allclose(loss3, ref3, rtol=1e-3, atol=1e-6), (loss3, ref3)

    print("KERNEL_OK")
</pallas_src>

<mosaic_0001>
module attributes {stable_mosaic.version = 11 : i64} {
  func.func @_csa_kernel(%arg0: i32, %arg1: memref<1x4x256xf32, #tpu.memory_space<vmem>>, %arg2: memref<1x4x256xf32, #tpu.memory_space<vmem>>, %arg3: memref<1x1x1xf32, #tpu.memory_space<vmem>>) attributes {dimension_semantics = [#tpu.dimension_semantics<parallel>], iteration_bounds = array<i64: 2>, scalar_prefetch = 0 : i64, scratch_operands = 0 : i64, tpu.core_type = #tpu.core_type<tc>, window_params = [{transform_indices = @transform_0, window_bounds = array<i64: 1, 4, 256>}, {transform_indices = @transform_1, window_bounds = array<i64: 1, 4, 256>}, {transform_indices = @transform_2, window_bounds = array<i64: 1, 1, 1>}]} {
    %c0 = arith.constant 0 : index
    %c0_0 = arith.constant 0 : index
    %c0_1 = arith.constant 0 : index
    %0 = vector.load %arg1[%c0, %c0_0, %c0_1] : memref<1x4x256xf32, #tpu.memory_space<vmem>>, vector<1x4x256xf32>
    %c0_2 = arith.constant 0 : index
    %c0_3 = arith.constant 0 : index
    %c0_4 = arith.constant 0 : index
    %1 = vector.load %arg2[%c0_2, %c0_3, %c0_4] : memref<1x4x256xf32, #tpu.memory_space<vmem>>, vector<1x4x256xf32>
    %2 = math.absf %1 : vector<1x4x256xf32>
    %cst = arith.constant dense<0.000000e+00> : vector<1x256xf32>
    %3 = vector.multi_reduction <add>, %2, %cst [1] : vector<1x4x256xf32> to vector<1x256xf32>
    %4 = vector.shape_cast %3 : vector<1x256xf32> to vector<1x1x256xf32>
    %cst_5 = arith.constant 2.500000e-01 : f32
    %5 = vector.broadcast %cst_5 : f32 to vector<1x1x256xf32>
    %6 = arith.mulf %4, %5 : vector<1x1x256xf32>
    %cst_6 = arith.constant dense<0xFF800000> : vector<1x1xf32>
    %7 = vector.multi_reduction <maximumf>, %6, %cst_6 [2] : vector<1x1x256xf32> to vector<1x1xf32>
    %8 = vector.shape_cast %7 : vector<1x1xf32> to vector<1x1x1xf32>
    %9 = vector.broadcast %8 : vector<1x1x1xf32> to vector<1x1x256xf32>
    %10 = arith.subf %6, %9 : vector<1x1x256xf32>
    %11 = math.exp %10 : vector<1x1x256xf32>
    %cst_7 = arith.constant dense<0.000000e+00> : vector<1x1xf32>
    %12 = vector.multi_reduction <add>, %11, %cst_7 [2] : vector<1x1x256xf32> to vector<1x1xf32>
    %13 = vector.shape_cast %12 : vector<1x1xf32> to vector<1x1x1xf32>
    %14 = vector.broadcast %13 : vector<1x1x1xf32> to vector<1x1x256xf32>
    %15 = arith.divf %11, %14 : vector<1x1x256xf32>
    %cst_8 = arith.constant 2.560000e+02 : f32
    %16 = vector.broadcast %cst_8 : f32 to vector<1x1x256xf32>
    %17 = arith.mulf %15, %16 : vector<1x1x256xf32>
    %cst_9 = arith.constant dense<0.000000e+00> : vector<1x4xf32>
    %18 = vector.multi_reduction <add>, %2, %cst_9 [2] : vector<1x4x256xf32> to vector<1x4xf32>
    %19 = vector.shape_cast %18 : vector<1x4xf32> to vector<1x4x1xf32>
    %cst_10 = arith.constant 3.906250e-03 : f32
    %20 = vector.broadcast %cst_10 : f32 to vector<1x4x1xf32>
    %21 = arith.mulf %19, %20 : vector<1x4x1xf32>
    %cst_11 = arith.constant dense<0xFF800000> : vector<1x1xf32>
    %22 = vector.multi_reduction <maximumf>, %21, %cst_11 [1] : vector<1x4x1xf32> to vector<1x1xf32>
    %23 = vector.shape_cast %22 : vector<1x1xf32> to vector<1x1x1xf32>
    %24 = vector.broadcast %23 : vector<1x1x1xf32> to vector<1x4x1xf32>
    %25 = arith.subf %21, %24 : vector<1x4x1xf32>
    %26 = math.exp %25 : vector<1x4x1xf32>
    %cst_12 = arith.constant dense<0.000000e+00> : vector<1x1xf32>
    %27 = vector.multi_reduction <add>, %26, %cst_12 [1] : vector<1x4x1xf32> to vector<1x1xf32>
    %28 = vector.shape_cast %27 : vector<1x1xf32> to vector<1x1x1xf32>
    %29 = vector.broadcast %28 : vector<1x1x1xf32> to vector<1x4x1xf32>
    %30 = arith.divf %26, %29 : vector<1x4x1xf32>
    %cst_13 = arith.constant 2.560000e+02 : f32
    %31 = vector.broadcast %cst_13 : f32 to vector<1x4x1xf32>
    %32 = arith.mulf %30, %31 : vector<1x4x1xf32>
    %33 = math.absf %0 : vector<1x4x256xf32>
    %cst_14 = arith.constant dense<0.000000e+00> : vector<1x256xf32>
    %34 = vector.multi_reduction <add>, %33, %cst_14 [1] : vector<1x4x256xf32> to vector<1x256xf32>
    %35 = vector.shape_cast %34 : vector<1x256xf32> to vector<1x1x256xf32>
    %cst_15 = arith.constant 2.500000e-01 : f32
    %36 = vector.broadcast %cst_15 : f32 to vector<1x1x256xf32>
    %37 = arith.mulf %35, %36 : vector<1x1x256xf32>
    %cst_16 = arith.constant dense<0xFF800000> : vector<1x1xf32>
    %38 = vector.multi_reduction <maximumf>, %37, %cst_16 [2] : vector<1x1x256xf32> to vector<1x1xf32>
    %39 = vector.shape_cast %38 : vector<1x1xf32> to vector<1x1x1xf32>
    %40 = vector.broadcast %39 : vector<1x1x1xf32> to vector<1x1x256xf32>
    %41 = arith.subf %37, %40 : vector<1x1x256xf32>
    %42 = math.exp %41 : vector<1x1x256xf32>
    %cst_17 = arith.constant dense<0.000000e+00> : vector<1x1xf32>
    %43 = vector.multi_reduction <add>, %42, %cst_17 [2] : vector<1x1x256xf32> to vector<1x1xf32>
    %44 = vector.shape_cast %43 : vector<1x1xf32> to vector<1x1x1xf32>
    %45 = vector.broadcast %44 : vector<1x1x1xf32> to vector<1x1x256xf32>
    %46 = arith.divf %42, %45 : vector<1x1x256xf32>
    %cst_18 = arith.constant 2.560000e+02 : f32
    %47 = vector.broadcast %cst_18 : f32 to vector<1x1x256xf32>
    %48 = arith.mulf %46, %47 : vector<1x1x256xf32>
    %cst_19 = arith.constant dense<0.000000e+00> : vector<1x4xf32>
    %49 = vector.multi_reduction <add>, %33, %cst_19 [2] : vector<1x4x256xf32> to vector<1x4xf32>
    %50 = vector.shape_cast %49 : vector<1x4xf32> to vector<1x4x1xf32>
    %cst_20 = arith.constant 3.906250e-03 : f32
    %51 = vector.broadcast %cst_20 : f32 to vector<1x4x1xf32>
    %52 = arith.mulf %50, %51 : vector<1x4x1xf32>
    %cst_21 = arith.constant dense<0xFF800000> : vector<1x1xf32>
    %53 = vector.multi_reduction <maximumf>, %52, %cst_21 [1] : vector<1x4x1xf32> to vector<1x1xf32>
    %54 = vector.shape_cast %53 : vector<1x1xf32> to vector<1x1x1xf32>
    %55 = vector.broadcast %54 : vector<1x1x1xf32> to vector<1x4x1xf32>
    %56 = arith.subf %52, %55 : vector<1x4x1xf32>
    %57 = math.exp %56 : vector<1x4x1xf32>
    %cst_22 = arith.constant dense<0.000000e+00> : vector<1x1xf32>
    %58 = vector.multi_reduction <add>, %57, %cst_22 [1] : vector<1x4x1xf32> to vector<1x1xf32>
    %59 = vector.shape_cast %58 : vector<1x1xf32> to vector<1x1x1xf32>
    %60 = vector.broadcast %59 : vector<1x1x1xf32> to vector<1x4x1xf32>
    %61 = arith.divf %57, %60 : vector<1x4x1xf32>
    %cst_23 = arith.constant 2.560000e+02 : f32
    %62 = vector.broadcast %cst_23 : f32 to vector<1x4x1xf32>
    %63 = arith.mulf %61, %62 : vector<1x4x1xf32>
    %64 = arith.addf %17, %48 : vector<1x1x256xf32>
    %cst_24 = arith.constant 5.000000e-01 : f32
    %65 = vector.broadcast %cst_24 : f32 to vector<1x1x256xf32>
    %66 = arith.mulf %64, %65 : vector<1x1x256xf32>
    %67 = arith.addf %32, %63 : vector<1x4x1xf32>
    %cst_25 = arith.constant 5.000000e-01 : f32
    %68 = vector.broadcast %cst_25 : f32 to vector<1x4x1xf32>
    %69 = arith.mulf %67, %68 : vector<1x4x1xf32>
    %70 = arith.subf %1, %0 : vector<1x4x256xf32>
    %71 = arith.mulf %70, %70 : vector<1x4x256xf32>
    %72 = vector.broadcast %66 : vector<1x1x256xf32> to vector<1x4x256xf32>
    %73 = arith.mulf %71, %72 : vector<1x4x256xf32>
    %cst_26 = arith.constant dense<0.000000e+00> : vector<1x4xf32>
    %74 = vector.multi_reduction <add>, %73, %cst_26 [2] : vector<1x4x256xf32> to vector<1x4xf32>
    %75 = vector.shape_cast %74 : vector<1x4xf32> to vector<1x4x1xf32>
    %76 = arith.mulf %75, %69 : vector<1x4x1xf32>
    %cst_27 = arith.constant dense<0.000000e+00> : vector<1x1xf32>
    %77 = vector.multi_reduction <add>, %76, %cst_27 [1] : vector<1x4x1xf32> to vector<1x1xf32>
    %78 = vector.shape_cast %77 : vector<1x1xf32> to vector<1x1x1xf32>
    %c0_28 = arith.constant 0 : index
    %c0_29 = arith.constant 0 : index
    %c0_30 = arith.constant 0 : index
    %79 = vector.load %arg3[%c0_28, %c0_29, %c0_30] : memref<1x1x1xf32, #tpu.memory_space<vmem>>, vector<1x1x1xf32>
    tpu.vector_store %arg3[%c0_28, %c0_29, %c0_30], %78 {strides = array<i32>} : memref<1x1x1xf32, #tpu.memory_space<vmem>>, vector<1x1x1xf32>,
    return
  }
  func.func @transform_0(%arg0: i32) -> (i32, i32, i32) {
    %c0_i32 = arith.constant 0 : i32
    %c0_i32_0 = arith.constant 0 : i32
    %c0_i32_1 = arith.constant 0 : i32
    return %arg0, %c0_i32, %c0_i32_0 : i32, i32, i32
  }
  func.func @transform_1(%arg0: i32) -> (i32, i32, i32) {
    %c0_i32 = arith.constant 0 : i32
    %c0_i32_0 = arith.constant 0 : i32
    %c0_i32_1 = arith.constant 0 : i32
    return %arg0, %c0_i32, %c0_i32_0 : i32, i32, i32
  }
  func.func @transform_2(%arg0: i32) -> (i32, i32, i32) {
    %c0_i32 = arith.constant 0 : i32
    %c0_i32_0 = arith.constant 0 : i32
    %c0_i32_1 = arith.constant 0 : i32
    return %arg0, %c0_i32, %c0_i32_0 : i32, i32, i32
  }
}

</mosaic_0001>

<bundles_post_ra>
// kernel: tpu_custom_call.1
= control target key start
LH: loop header
LB: loop body
LE: loop exit
PB: predicated region body
PF: predicated region fallthrough
CT: control target
= control target key end

     0   :  { %7 = vsyncpa [#allocation3], 0  ;;  %s804_s0 = inlined_call_operand.hbm [shape: f32[2,4,256], index: 0, kind: input, shape index: {}]   ;;  %s805_s1 = inlined_call_operand.hbm [shape: f32[2,4,256], index: 1, kind: input, shape index: {}]   ;;  %s806_s2 = inlined_call_operand.vmem [shape: f32[2,1,1], index: 2, kind: output, shape index: {}]  }
   0x1   :  { %9 = vsyncpa [#allocation3 + $0x1], 0 }
   0x2   :  { %10 = vsyncpa [#allocation5], 0 }
   0x3   :  { %12 = vsyncpa [#allocation5 + $0x1], 0  ;;  %s631_s9 = smov 0   ;;  %s633_s10 = smov 0  }
   0x4   :  { %s635_s11 = smov 0   ;;  %s637_s12 = smov 0  }
   0x5 LB: > { %s650_s13 = sadd.s32 4294967295, %s612_s12   ;;  %s653_s14 = sadd.s32 1, %s612_s12   ;;  %s612_s12 = sphi %s637_s12, %s818_s12   ;;  %s608_s11 = sphi %s635_s11, %s817_s11   ;;  %s604_s10 = sphi %s633_s10, %s816_s10   ;;  %s600_s9 = sphi %s631_s9, %s815_s9  }
   0x6   : > { %s22_s15 = ssub.s32 %s612_s12, %s653_s14  ;;  %s25_s16 = sadd.s32 1, %s608_s11 }
   0x7   : > { %p23_p0 = scmp.eq.s32.totalorder %s22_s15, 0  ;;  %p32_p1 = scmp.ne.s32.totalorder %s608_s11, %s604_s10 }
   0x8   : > { %p33_p2 = scmp.eq.s32.totalorder %s612_s12, 0  ;;  %p38_p3 = scmp.ne.s32.totalorder %s604_s10, %s600_s9 }
   0x9   : > { %s663_s17 = scalar_select %p23_p0, %s608_s11, %s25_s16  }
   0xa   : > { %p34_p4 = por %p33_p2, %p32_p1  ;;  %p39_p5 = scmp.eq.s32.totalorder %s650_s13, 0 }
   0xb   : > { %p461_p6 = scmp.lt.s32.totalorder %s612_s12, 2  ;;  %s672_s19 = sand.u32 1, %s608_s11  }
   0xc   : > { %p667_p7 = por %p39_p5, %p38_p3  ;;  %s437_s20 = sshll.u32 %s672_s19, 3 }
   0xd   : > { %s448_s21 = sshll.u32 %s612_s12, 7  ;;  %s118_s25 = scalar_lea.vmem [#allocation2], %s437_s20 }
   0xe   : > { %s808_s18 = scalar_select %p667_p7, 1, 0 }
   0xf   : > { %s681_s24 = scalar_lea.hbm %s804_s0, %s448_s21  ;;  %s126_s26 = sshll.u32 %s118_s25, 4  ;;  %s685_s26 = int_to_ptr.vmem [resolvable:$true] %s126_s26 }
  0x10   : > { %p687_p8 = pnand %p461_p6, %p34_p4  ;;  %s115_s28 = scalar_lea.sflag [#allocation3], %s672_s19 }
  0x11   : > { %s514_s29 = scalar_lea.hbm %s681_s24, 128  ;;  %s519_s4 = scalar_lea.hbm %s804_s0, 256 }
  0x12   : > { %p515_p11 = scmp.ne.s32.totalorder %s681_s24, %s514_s29  ;;  %p516_p12 = pneg %p687_p8 }
  0x13   : > { %p520_p1 = scmp.lt.u32.totalorder %s681_s24, %s804_s0  ;;  %p521_p2 = scmp.lt.u32.totalorder %s519_s4, %s514_s29 }
  0x14   : > { %p517_p13 = pnand %p516_p12, %p515_p11  ;;  %p523_p4 = scmp.lt.u32.totalorder %s514_s29, %s681_s24 }
  0x15   : > { %p522_p3 = por %p521_p2, %p520_p1 }
  0x16   : > { %p518_p0 = pneg %p517_p13 }
  0x17   : > { %p524_p5 = por %p523_p4, %p522_p3 }
  0x19   : > { %p525_p6 = pnand %p524_p5, %p518_p0 }
  0x1b   : > { %528 = shalt.err (!%p525_p6)
}
  0x1c   : > { %s529_s7 = scalar_lea.vmem %s685_s26, 128  ;;  %s614_s8 = smov [#allocation2]  }
  0x1d   : > { %p530_p11 = scmp.ne.s32.totalorder %s685_s26, %s529_s7  ;;  %s534_s9 = sshll.u32 %s614_s8, 4  ;;  %s535_s9 = int_to_ptr.vmem [resolvable:$false] %s534_s9 }
  0x1e   : > { %s536_s15 = scalar_lea.vmem %s535_s9, 256  ;;  %p537_p10 = scmp.lt.s32.totalorder %s685_s26, %s535_s9 }
  0x1f   : > { %p532_p13 = pnand %p530_p11, %p516_p12  ;;  %p538_p1 = scmp.lt.s32.totalorder %s536_s15, %s529_s7 }
  0x21   : > { %p533_p9 = pneg %p532_p13  ;;  %p539_p2 = por %p538_p1, %p537_p10 }
  0x23   : > { %p540_p3 = pnand %p539_p2, %p533_p9 }
  0x25   : > { %543 = shalt.err (!%p540_p3)
}
  0x26   : > { %457 = dma.hbm_to_vmem [thread:$0]  (!%p687_p8), %s681_s24, 128, %s685_s26, %s115_s28  }
  0x27   : > { %p810_p0 = scmp.lt.s32.totalorder %s612_s12, 3  ;;  %p811_p4 = scmp.ge.s32.totalorder %s612_s12, 1 }
  0x28   : > { %s732_s25 = scalar_lea.hbm %s805_s1, %s448_s21  ;;  %s137_s29 = scalar_lea.vmem [#allocation4], %s437_s20 }
  0x29   : > { %p723_p5 = pnand %p811_p4, %p810_p0  ;;  %s145_s30 = sshll.u32 %s137_s29, 4  ;;  %s146_s30 = int_to_ptr.vmem [resolvable:$true] %s145_s30 }
  0x2a   : > { %s134_s24 = scalar_lea.sflag [#allocation5], %s672_s19  ;;  %s544_s26 = scalar_lea.hbm %s732_s25, 128 }
  0x2b   : > { %s812_s16 = scalar_select %p723_p5, 1, 0 }
  0x2c   : > { %p545_p9 = scmp.ne.s32.totalorder %s732_s25, %s544_s26  ;;  %s549_s21 = scalar_lea.hbm %s805_s1, 256 }
  0x2d   : > { %p550_p11 = scmp.lt.u32.totalorder %s732_s25, %s805_s1  ;;  %p551_p13 = scmp.lt.u32.totalorder %s549_s21, %s544_s26 }
  0x2e   : > { %p547_p10 = pnand %p545_p9, %p516_p12  ;;  %p553_p2 = scmp.lt.u32.totalorder %s544_s26, %s732_s25 }
  0x2f   : > { %p552_p1 = por %p551_p13, %p550_p11 }
  0x30   : > { %p548_p6 = pneg %p547_p10 }
  0x31   : > { %p554_p3 = por %p553_p2, %p552_p1 }
  0x33   : > { %p555_p0 = pnand %p554_p3, %p548_p6 }
  0x35   : > { %558 = shalt.err (!%p555_p0)
}
  0x36   : > { %s559_s19 = scalar_lea.vmem %s146_s30, 128  ;;  %s615_s20 = smov [#allocation4]  }
  0x37   : > { %p560_p4 = scmp.ne.s32.totalorder %s146_s30, %s559_s19  ;;  %s564_s5 = sshll.u32 %s615_s20, 4  ;;  %s565_s5 = int_to_ptr.vmem [resolvable:$false] %s564_s5 }
  0x38   : > { %s566_s6 = scalar_lea.vmem %s565_s5, 256  ;;  %p567_p7 = scmp.lt.s32.totalorder %s146_s30, %s565_s5 }
  0x39   : > { %p562_p9 = pnand %p560_p4, %p516_p12  ;;  %p568_p5 = scmp.lt.s32.totalorder %s566_s6, %s559_s19 }
  0x3b   : > { %p563_p10 = pneg %p562_p9  ;;  %p569_p11 = por %p568_p5, %p567_p7 }
  0x3d   : > { %p570_p13 = pnand %p569_p11, %p563_p10 }
  0x3f   : > { %573 = shalt.err (!%p570_p13)
}
  0x40   : > { %460 = dma.hbm_to_vmem [thread:$0]  (!%p687_p8), %s732_s25, 128, %s146_s30, %s134_s24  }
  0x41   : > { %p813_p6 = scmp.ne.s32.totalorder %s812_s16, 0 }
  0x42   : > { %s156_s7 = sand.u32 (!%p813_p6), 1, %s604_s10   ;;  %p814_p12 = scmp.ne.s32.totalorder (!%p813_p6), %s808_s18, 0 }
  0x43   : > { %154 = sbr.rel (%p813_p6) target bundleno = 591 (0x24f), region = 28  ;;  %s444_s8 = sshll.u32 (!%p813_p6), %s156_s7, 3 }
  0x44   : > { %s157_s9 = scalar_lea.sflag (!%p813_p6), [#allocation3], %s156_s7  ;;  %s160_s15 = scalar_lea.vmem (!%p813_p6), [#allocation2], %s444_s8 }
  0x4a   : > { %591 = dma.done.wait (%p814_p12), %s157_s9, 128  }
  0x4b   : > { %593 = vsyncadd (%p814_p12), %s157_s9, 4294967168  ;;  %s166_s22 = scalar_lea.sflag [#allocation5], %s156_s7  ;;  %s169_s23 = scalar_lea.vmem [#allocation4], %s444_s8 }
  0x4c   : > { %595 = dma.done.wait (%p814_p12), %s166_s22, 128  }
  0x4d   : > { %597 = vsyncadd (%p814_p12), %s166_s22, 4294967168  ;;  %v767_v0 = vld [vmem:[%s169_s23] sm:$0xff]  ;;  %vm202_vm0 = vcmask 1043456   ;;  %v769_v1 = vld [vmem:[%s160_s15] sm:$0xff]  ;;  %p193_p7 = scmp.lt.s32.totalorder %s650_s13, 1  ;;  %vm350_vm1 = vcmask 0  }
  0x4e   : > { %v198_v2 = vand.u32 2147483647, %v767_v0  ;;  %v260_v3 = vand.u32 2147483647, %v769_v1 }
  0x4f   : > { %s820_s13 = smov (!%p193_p7, %s650_s13), 1 }
  0x50   : > { %v200_v4 = vcombine.high %v198_v2, %v198_v2  ;;  %v203_v5 = vsel %vm202_vm0, %v198_v2, 0.0  ;;  %v262_v6 = vcombine.high %v260_v3, %v260_v3  ;;  %v264_v7 = vsel %vm202_vm0, %v260_v3, 0.0  ;;  %s195_s16 = scalar_lea.vmem %s806_s2, %s820_s13 }
  0x51   : > { %v204_v8 = vrot.slane %v203_v5, 4  ;;  %v265_v9 = vrot.slane %v264_v7, 4 }
  0x52   : > { %v210_v10 = vsel %vm202_vm0, %v200_v4, 0.0  ;;  %v271_v11 = vsel %vm202_vm0, %v262_v6, 0.0  ;;  %v327_v4 = vsub.f32 %v767_v0, %v769_v1 }
  0x53   : > { %v205_v12 = vadd.f32 %v204_v8, %v203_v5  ;;  %v211_v13 = vrot.slane %v210_v10, 4  ;;  %v266_v14 = vadd.f32 %v265_v9, %v264_v7  ;;  %v272_v15 = vrot.slane %v271_v11, 4 }
  0x54   : > { %v236_v40 = vadd.f32 %v210_v10, %v203_v5  ;;  %v297_v41 = vadd.f32 %v271_v11, %v264_v7 }
  0x55   : > { %v206_v16 = vrot.slane %v205_v12, 2  ;;  %v212_v17 = vadd.f32 %v211_v13, %v210_v10  ;;  %v267_v18 = vrot.slane %v266_v14, 2  ;;  %v273_v19 = vadd.f32 %v272_v15, %v271_v11 }
  0x56   : > { %v328_v13 = vmul.f32 %v327_v4, %v327_v4 }
  0x57   : > { %v207_v20 = vadd.f32 %v206_v16, %v205_v12  ;;  %v213_v21 = vrot.slane %v212_v17, 2  ;;  %v268_v22 = vadd.f32 %v267_v18, %v266_v14  ;;  %v274_v23 = vrot.slane %v273_v19, 2 }
  0x59   : > { %v208_v24 = vrot.slane %v207_v20, 1  ;;  %v214_v25 = vadd.f32 %v213_v21, %v212_v17  ;;  %v269_v26 = vrot.slane %v268_v22, 1  ;;  %v275_v27 = vadd.f32 %v274_v23, %v273_v19 }
  0x5b   : > { %v209_v28 = vadd.f32 %v208_v24, %v207_v20  ;;  %v215_v29 = vrot.slane %v214_v25, 1  ;;  %v270_v30 = vadd.f32 %v269_v26, %v268_v22  ;;  %v276_v31 = vrot.slane %v275_v27, 1 }
  0x5d   : > { %v216_v32 = vadd.f32 %v215_v29, %v214_v25  ;;  %v217_v33 = vmul.f32 0.25, %v209_v28  ;;  %v277_v34 = vadd.f32 %v276_v31, %v275_v27  ;;  %v278_v36 = vmul.f32 0.25, %v270_v30 }
  0x5f   : > { %v218_v35 = vmul.f32 0.25, %v216_v32  ;;  %v279_v37 = vmul.f32 0.25, %v277_v34 }
  0x61   : > { %v219_v38 = vmax.f32 %v217_v33, %v218_v35  ;;  %v280_v39 = vmax.f32 %v278_v36, %v279_v37 }
  0x63   : > { %220 = vmax.xlane.f32.xlu0 %v219_v38 }
  0x67   : > { %281 = vmax.xlane.f32.xlu0 %v280_v39 }
  0x6b   : > { %237 = vadd.xlane.f32.xlu0 %v236_v40 }
  0xf0   : > { %v221_v42 = vpop.xlane.xlu0 %220 }
  0xf1   : > { %v222_v43 = vsub.f32 %v217_v33, %v221_v42  ;;  %v223_v44 = vsub.f32 %v218_v35, %v221_v42 }
  0xf3   : > { %v224_v45 = vmul.f32 1.442695, %v222_v43  ;;  %v226_v46 = vmul.f32 1.442695, %v223_v44 }
  0xf4   : > { %v282_v47 = vpop.xlane.xlu0 %281 }
  0xf5   : > { %494 = vpow2.f32 %v224_v45  ;;  %v283_v48 = vsub.f32 %v278_v36, %v282_v47  ;;  %v284_v49 = vsub.f32 %v279_v37, %v282_v47 }
  0xf6   : > { %496 = vpow2.f32 %v226_v46 }
  0xf7   : > { %v285_v50 = vmul.f32 1.442695, %v283_v48  ;;  %v287_v51 = vmul.f32 1.442695, %v284_v49 }
  0xf8   : > { %v238_v20 = vpop.xlane.xlu0 %237 }
  0xf9   : > { %498 = vpow2.f32 %v285_v50  ;;  %v239_v1 = vmul.f32 0.00390625, %v238_v20 }
  0xfa   : > { %500 = vpow2.f32 %v287_v51 }
  0xfb   : > { %v240_v22 = vsel %vm202_vm0, %v239_v1, -inf }
  0xfc   : > { %v241_v24 = vrot.slane %v240_v22, 4 }
  0xfe   : > { %v242_v26 = vmax.f32 %v240_v22, %v241_v24 }
  0xff   : > { %v495_v52 = vpop.eup %494 }
 0x100   : > { %v497_v53 = vpop.eup %496  ;;  %v243_v28 = vrot.slane %v242_v26, 2 }
 0x101   : > { %v228_v54 = vadd.f32 %v497_v53, %v495_v52 }
 0x102   : > { %v244_v30 = vmax.f32 %v242_v26, %v243_v28 }
 0x103   : > { %v499_v55 = vpop.eup %498  ;;  %229 = vadd.xlane.f32.xlu1 %v228_v54 }
 0x104   : > { %v501_v56 = vpop.eup %500  ;;  %v245_v32 = vrot.slane %v244_v30, 1 }
 0x105   : > { %v289_v57 = vadd.f32 %v501_v56, %v499_v55 }
 0x106   : > { %v246_v34 = vmax.f32 %v244_v30, %v245_v32 }
 0x107   : > { %290 = vadd.xlane.f32.xlu1 %v289_v57 }
 0x108   : > { %v247_v36 = vsub.f32 %v239_v1, %v246_v34 }
 0x10a   : > { %v248_v38 = vmul.f32 1.442695, %v247_v36 }
 0x10b   : > { %298 = vadd.xlane.f32.xlu1 %v297_v41 }
 0x190   : > { %v230_v58 = vpop.xlane.xlu1 %229 }
 0x191   : > { %502 = vrcp.f32 %v230_v58 }
 0x194   : > { %v291_v59 = vpop.xlane.xlu1 %290 }
 0x195   : > { %504 = vrcp.f32 %v291_v59 }
 0x196   : > { %506 = vpow2.f32 %v248_v38 }
 0x198   : > { %v299_v0 = vpop.xlane.xlu1 %298 }
 0x199   : > { %v300_v21 = vmul.f32 0.00390625, %v299_v0 }
 0x19b   : > { %v503_v60 = vpop.eup %502  ;;  %v301_v23 = vsel %vm202_vm0, %v300_v21, -inf }
 0x19c   : > { %v232_v61 = vmul.f32 %v503_v60, %v495_v52  ;;  %v233_v62 = vmul.f32 %v503_v60, %v497_v53  ;;  %v302_v25 = vrot.slane %v301_v23, 4 }
 0x19e   : > { %v234_v5 = vmul.f32 256.0, %v232_v61  ;;  %v235_v6 = vmul.f32 256.0, %v233_v62  ;;  %v303_v27 = vmax.f32 %v301_v23, %v302_v25 }
 0x19f   : > { %v505_v63 = vpop.eup %504 }
 0x1a0   : > { %v293_v2 = vmul.f32 %v505_v63, %v499_v55  ;;  %v294_v3 = vmul.f32 %v505_v63, %v501_v56  ;;  %v304_v29 = vrot.slane %v303_v27, 2  ;;  %v507_v40 = vpop.eup %506 }
 0x1a1   : > { %v250_v42 = vsel %vm202_vm0, %v507_v40, 0.0 }
 0x1a2   : > { %v295_v7 = vmul.f32 256.0, %v293_v2  ;;  %v296_v8 = vmul.f32 256.0, %v294_v3  ;;  %v305_v31 = vmax.f32 %v303_v27, %v304_v29  ;;  %v251_v44 = vrot.slane %v250_v42, 4 }
 0x1a4   : > { %v321_v9 = vadd.f32 %v295_v7, %v234_v5  ;;  %v322_v10 = vadd.f32 %v296_v8, %v235_v6  ;;  %v306_v33 = vrot.slane %v305_v31, 1  ;;  %v252_v46 = vadd.f32 %v251_v44, %v250_v42 }
 0x1a6   : > { %v323_v11 = vmul.f32 0.5, %v321_v9  ;;  %v324_v12 = vmul.f32 0.5, %v322_v10  ;;  %v307_v35 = vmax.f32 %v305_v31, %v306_v33  ;;  %v253_v48 = vrot.slane %v252_v46, 2 }
 0x1a8   : > { %v331_v14 = vcombine.low %v323_v11, %v324_v12  ;;  %v308_v37 = vsub.f32 %v300_v21, %v307_v35  ;;  %v254_v50 = vadd.f32 %v253_v48, %v252_v46 }
 0x1aa   : > { %v333_v15 = vmul.f32 %v331_v14, %v328_v13  ;;  %v309_v39 = vmul.f32 1.442695, %v308_v37  ;;  %v255_v52 = vrot.slane %v254_v50, 1 }
 0x1ac   : > { %v335_v16 = vcombine.high %v333_v15, %v333_v15  ;;  %v337_v17 = vsel %vm202_vm0, %v333_v15, 0.0  ;;  %508 = vpow2.f32 %v309_v39  ;;  %v256_v54 = vadd.f32 %v255_v52, %v254_v50 }
 0x1ae   : > { %v338_v18 = vsel %vm202_vm0, %v335_v16, 0.0  ;;  %510 = vrcp.f32 %v256_v54 }
 0x1af   : > { %v339_v19 = vadd.f32 %v338_v18, %v337_v17 }
 0x1b1   : > { %340 = vadd.xlane.f32.xlu0 %v339_v19 }
 0x1b6   : > { %v509_v41 = vpop.eup %508 }
 0x1b7   : > { %v311_v43 = vsel %vm202_vm0, %v509_v41, 0.0 }
 0x1b8   : > { %v312_v45 = vrot.slane %v311_v43, 4  ;;  %v511_v56 = vpop.eup %510 }
 0x1b9   : > { %v258_v58 = vmul.f32 %v511_v56, %v507_v40 }
 0x1ba   : > { %v313_v47 = vadd.f32 %v312_v45, %v311_v43 }
 0x1bb   : > { %v259_v60 = vmul.f32 256.0, %v258_v58 }
 0x1bc   : > { %v314_v49 = vrot.slane %v313_v47, 2 }
 0x1be   : > { %v315_v51 = vadd.f32 %v314_v49, %v313_v47 }
 0x1c0   : > { %v316_v53 = vrot.slane %v315_v51, 1 }
 0x1c2   : > { %v317_v55 = vadd.f32 %v316_v53, %v315_v51 }
 0x1c4   : > { %512 = vrcp.f32 %v317_v55 }
 0x1ce   : > { %v513_v57 = vpop.eup %512 }
 0x1cf   : > { %v319_v59 = vmul.f32 %v513_v57, %v509_v41 }
 0x1d1   : > { %v320_v61 = vmul.f32 256.0, %v319_v59 }
 0x1d3   : > { %v325_v62 = vadd.f32 %v320_v61, %v259_v60 }
 0x1d5   : > { %v326_v63 = vmul.f32 0.5, %v325_v62 }
 0x23e   : > { %v341_v2 = vpop.xlane.xlu0 %340 }
 0x23f   : > { %v342_v3 = vmul.f32 %v341_v2, %v326_v63 }
 0x241   : > { %v343_v4 = vsel %vm202_vm0, %v342_v3, 0.0 }
 0x242   : > { %v344_v5 = vrot.slane %v343_v4, 4 }
 0x244   : > { %v345_v6 = vadd.f32 %v344_v5, %v343_v4 }
 0x246   : > { %v346_v7 = vrot.slane %v345_v6, 2 }
 0x248   : > { %v347_v8 = vadd.f32 %v346_v7, %v345_v6 }
 0x24a   : > { %v348_v9 = vrot.slane %v347_v8, 1 }
 0x24c   : > { %v349_v10 = vadd.f32 %v348_v9, %v347_v8 }
 0x24e   : > { %351 = vst.msk [vmem:[%s195_s16] sm:$0x1] %vm350_vm1, %v349_v10 }
 0x24f PF: > { %p15_p8 = scmp.ge.s32.totalorder %s653_s14, 4   ;;  %s815_s9 = smov %s604_s10 }
 0x250   : > { %s816_s10 = smov %s608_s11  ;;  %s817_s11 = smov %s663_s17 }
 0x251   : > { %s818_s12 = smov %s653_s14  ;;  %17 = sbr.rel (!%p15_p8) target bundleno = 5 (0x5), region = 81 }
 0x258   :  { %369 = vsyncpa [#allocation3], 1 }
 0x259   :  { %371 = vsyncpa [#allocation3 + $0x1], 1 }
 0x25a   :  { %372 = vsyncpa [#allocation5], 1 }
 0x25b   :  { %374 = vsyncpa [#allocation5 + $0x1], 1 }

</bundles_post_ra>
